<compile_context>
chip_gen: v5e
topology: v5e:2x2
jax: 0.10.0
libtpu: 0.0.40
codegen_flags: <defaults>
</compile_context>

<pallas_src>
import jax
import jax.numpy as jnp
from jax.experimental import pallas as pl
from jax.experimental.pallas import tpu as pltpu

_BLOCK_R = 256    # row tile (multiple of 8)
_BLOCK_P = 1024   # pixel (lane) tile (multiple of 128)


# ----------------------------------------------------------------------------
# Kernel: out = sigmoid(w0)*x1 + sigmoid(w1)*x2 + sigmoid(w2)*x3 + sigmoid(w3)*x4
#   w_ref  : (br, 4)  raw (pre-sigmoid) per-row weights
#   x*_ref : (br, bp) row/pixel tiles
# ----------------------------------------------------------------------------
def _sigmoid_fuse_kernel(w_ref, x1_ref, x2_ref, x3_ref, x4_ref, o_ref):
    w = w_ref[...].astype(jnp.float32)                 # (br, 4)
    s = 1.0 / (1.0 + jnp.exp(-w))                      # sigmoid -> exp on EUP (free slot)
    acc = (s[:, 0:1] * x1_ref[...].astype(jnp.float32)
           + s[:, 1:2] * x2_ref[...].astype(jnp.float32)
           + s[:, 2:3] * x3_ref[...].astype(jnp.float32)
           + s[:, 3:4] * x4_ref[...].astype(jnp.float32))
    o_ref[...] = acc.astype(o_ref.dtype)


def _pick_block(dim, max_block, align):
    # If the whole axis fits, use the full extent (always a legal block dim).
    # Otherwise use an aligned max block and let Pallas mask the partial tail tile.
    return dim if dim <= max_block else max_block


def sigmoid_attention_fusion(weights, x1, x2, x3, x4):
    """weights: (4, C, 1, 1); x_i: (N, C, H, W).  Returns (N, C, H, W)."""
    N, C, H, W = x1.shape
    R, P = N * C, H * W

    # Per-row (n, c) -> raw weight column (4,); tiny (R*4) array built once in the wrapper.
    w_rows = jnp.broadcast_to(weights.reshape(4, C).T[None], (N, C, 4)).reshape(R, 4)

    # Pure reshapes (no transpose): the big pixel axis becomes the lane axis.
    xs = [x.reshape(R, P) for x in (x1, x2, x3, x4)]

    br = _pick_block(R, _BLOCK_R, 8)
    bp = _pick_block(P, _BLOCK_P, 128)
    grid = (pl.cdiv(R, br), pl.cdiv(P, bp))

    x_spec = pl.BlockSpec((br, bp), lambda i, j: (i, j))
    out = pl.pallas_call(
        _sigmoid_fuse_kernel,
        out_shape=jax.ShapeDtypeStruct((R, P), x1.dtype),
        grid=grid,
        in_specs=[
            pl.BlockSpec((br, 4), lambda i, j: (i, 0)),   # per-row raw weights
            x_spec, x_spec, x_spec, x_spec,
        ],
        out_specs=pl.BlockSpec((br, bp), lambda i, j: (i, j)),
        compiler_params=pltpu.CompilerParams(
            dimension_semantics=("parallel", "parallel")),
    )(w_rows, *xs)

    return out.reshape(N, C, H, W)


class SigmoidAttentionFusion:
    """Functional port of the PyTorch SigmoidAttentionFusion module."""

    def __init__(self, num_features, key):
        # matches nn.Parameter(torch.randn(4, num_features, 1, 1)) (random init)
        self.weights = jax.random.normal(key, (4, num_features, 1, 1), jnp.float32)

    def __call__(self, x1, x2, x3, x4):
        return sigmoid_attention_fusion(self.weights, x1, x2, x3, x4)


# ----------------------------------------------------------------------------
if __name__ == "__main__":
    key = jax.random.PRNGKey(0)
    k_w, k1, k2, k3, k4 = jax.random.split(key, 5)

    N, C, H, W = 2, 4, 16, 16
    x1 = jax.random.normal(k1, (N, C, H, W), jnp.float32)
    x2 = jax.random.normal(k2, (N, C, H, W), jnp.float32)
    x3 = jax.random.normal(k3, (N, C, H, W), jnp.float32)
    x4 = jax.random.normal(k4, (N, C, H, W), jnp.float32)

    model = SigmoidAttentionFusion(C, k_w)
    fused = model(x1, x2, x3, x4)
    jax.block_until_ready(fused)

    # Pure-JAX reference (mirrors the PyTorch forward exactly).
    s = jax.nn.sigmoid(model.weights)   # (4, C, 1, 1) broadcasts over (N, C, H, W)
    ref = s[0] * x1 + s[1] * x2 + s[2] * x3 + s[3] * x4

    assert fused.shape == (N, C, H, W)
    assert bool(jnp.all(jnp.isfinite(fused)))
    assert bool(jnp.allclose(fused, ref, atol=1e-5, rtol=1e-5))
    print("KERNEL_OK")
</pallas_src>

<mosaic_0001>
module attributes {stable_mosaic.version = 11 : i64} {
  func.func @_sigmoid_fuse_kernel(%arg0: i32, %arg1: i32, %arg2: memref<8x4xf32, #tpu.memory_space<vmem>>, %arg3: memref<8x256xf32, #tpu.memory_space<vmem>>, %arg4: memref<8x256xf32, #tpu.memory_space<vmem>>, %arg5: memref<8x256xf32, #tpu.memory_space<vmem>>, %arg6: memref<8x256xf32, #tpu.memory_space<vmem>>, %arg7: memref<8x256xf32, #tpu.memory_space<vmem>>) attributes {dimension_semantics = [#tpu.dimension_semantics<parallel>, #tpu.dimension_semantics<parallel>], iteration_bounds = array<i64: 1, 1>, scalar_prefetch = 0 : i64, scratch_operands = 0 : i64, tpu.core_type = #tpu.core_type<tc>, window_params = [{transform_indices = @transform_0, window_bounds = array<i64: 8, 4>}, {transform_indices = @transform_1, window_bounds = array<i64: 8, 256>}, {transform_indices = @transform_2, window_bounds = array<i64: 8, 256>}, {transform_indices = @transform_3, window_bounds = array<i64: 8, 256>}, {transform_indices = @transform_4, window_bounds = array<i64: 8, 256>}, {transform_indices = @transform_5, window_bounds = array<i64: 8, 256>}]} {
    %c0 = arith.constant 0 : index
    %c0_0 = arith.constant 0 : index
    %0 = vector.load %arg2[%c0, %c0_0] : memref<8x4xf32, #tpu.memory_space<vmem>>, vector<8x4xf32>
    %cst = arith.constant 0.000000e+00 : f32
    %1 = vector.broadcast %cst : f32 to vector<8x4xf32>
    %2 = arith.subf %1, %0 : vector<8x4xf32>
    %3 = math.exp %2 : vector<8x4xf32>
    %cst_1 = arith.constant 1.000000e+00 : f32
    %4 = vector.broadcast %cst_1 : f32 to vector<8x4xf32>
    %5 = arith.addf %4, %3 : vector<8x4xf32>
    %cst_2 = arith.constant 1.000000e+00 : f32
    %6 = vector.broadcast %cst_2 : f32 to vector<8x4xf32>
    %7 = arith.divf %6, %5 : vector<8x4xf32>
    %8 = vector.extract_strided_slice %7 {offsets = [0, 0], sizes = [8, 1], strides = [1, 1]} : vector<8x4xf32> to vector<8x1xf32>
    %c0_3 = arith.constant 0 : index
    %c0_4 = arith.constant 0 : index
    %9 = vector.load %arg3[%c0_3, %c0_4] : memref<8x256xf32, #tpu.memory_space<vmem>>, vector<8x256xf32>
    %10 = vector.broadcast %8 : vector<8x1xf32> to vector<8x256xf32>
    %11 = arith.mulf %10, %9 : vector<8x256xf32>
    %12 = vector.extract_strided_slice %7 {offsets = [0, 1], sizes = [8, 1], strides = [1, 1]} : vector<8x4xf32> to vector<8x1xf32>
    %c0_5 = arith.constant 0 : index
    %c0_6 = arith.constant 0 : index
    %13 = vector.load %arg4[%c0_5, %c0_6] : memref<8x256xf32, #tpu.memory_space<vmem>>, vector<8x256xf32>
    %14 = vector.broadcast %12 : vector<8x1xf32> to vector<8x256xf32>
    %15 = arith.mulf %14, %13 : vector<8x256xf32>
    %16 = arith.addf %11, %15 : vector<8x256xf32>
    %17 = vector.extract_strided_slice %7 {offsets = [0, 2], sizes = [8, 1], strides = [1, 1]} : vector<8x4xf32> to vector<8x1xf32>
    %c0_7 = arith.constant 0 : index
    %c0_8 = arith.constant 0 : index
    %18 = vector.load %arg5[%c0_7, %c0_8] : memref<8x256xf32, #tpu.memory_space<vmem>>, vector<8x256xf32>
    %19 = vector.broadcast %17 : vector<8x1xf32> to vector<8x256xf32>
    %20 = arith.mulf %19, %18 : vector<8x256xf32>
    %21 = arith.addf %16, %20 : vector<8x256xf32>
    %22 = vector.extract_strided_slice %7 {offsets = [0, 3], sizes = [8, 1], strides = [1, 1]} : vector<8x4xf32> to vector<8x1xf32>
    %c0_9 = arith.constant 0 : index
    %c0_10 = arith.constant 0 : index
    %23 = vector.load %arg6[%c0_9, %c0_10] : memref<8x256xf32, #tpu.memory_space<vmem>>, vector<8x256xf32>
    %24 = vector.broadcast %22 : vector<8x1xf32> to vector<8x256xf32>
    %25 = arith.mulf %24, %23 : vector<8x256xf32>
    %26 = arith.addf %21, %25 : vector<8x256xf32>
    %c0_11 = arith.constant 0 : index
    %c0_12 = arith.constant 0 : index
    %27 = vector.load %arg7[%c0_11, %c0_12] : memref<8x256xf32, #tpu.memory_space<vmem>>, vector<8x256xf32>
    tpu.vector_store %arg7[%c0_11, %c0_12], %26 {strides = array<i32>} : memref<8x256xf32, #tpu.memory_space<vmem>>, vector<8x256xf32>,
    return
  }
  func.func @transform_0(%arg0: i32, %arg1: i32) -> (i32, i32) {
    %c0_i32 = arith.constant 0 : i32
    %c0_i32_0 = arith.constant 0 : i32
    return %arg0, %c0_i32 : i32, i32
  }
  func.func @transform_1(%arg0: i32, %arg1: i32) -> (i32, i32) {
    %c0_i32 = arith.constant 0 : i32
    return %arg0, %arg1 : i32, i32
  }
  func.func @transform_2(%arg0: i32, %arg1: i32) -> (i32, i32) {
    %c0_i32 = arith.constant 0 : i32
    return %arg0, %arg1 : i32, i32
  }
  func.func @transform_3(%arg0: i32, %arg1: i32) -> (i32, i32) {
    %c0_i32 = arith.constant 0 : i32
    return %arg0, %arg1 : i32, i32
  }
  func.func @transform_4(%arg0: i32, %arg1: i32) -> (i32, i32) {
    %c0_i32 = arith.constant 0 : i32
    return %arg0, %arg1 : i32, i32
  }
  func.func @transform_5(%arg0: i32, %arg1: i32) -> (i32, i32) {
    %c0_i32 = arith.constant 0 : i32
    return %arg0, %arg1 : i32, i32
  }
}

</mosaic_0001>

<bundles_post_ra>
// kernel: tpu_custom_call.1
= control target key start
LH: loop header
LB: loop body
LE: loop exit
PB: predicated region body
PF: predicated region fallthrough
CT: control target
= control target key end

     0   :  { %10 = vsyncpa [#allocation3], 0  ;;  %s359_s0 = inlined_call_operand.vmem [shape: f32[8,4], index: 0, kind: input, shape index: {}]   ;;  %s360_s1 = inlined_call_operand.hbm [shape: f32[8,256], index: 1, kind: input, shape index: {}]   ;;  %s361_s2 = inlined_call_operand.hbm [shape: f32[8,256], index: 2, kind: input, shape index: {}]   ;;  %s362_s3 = inlined_call_operand.hbm [shape: f32[8,256], index: 3, kind: input, shape index: {}]   ;;  %s363_s4 = inlined_call_operand.hbm [shape: f32[8,256], index: 4, kind: input, shape index: {}]   ;;  %s364_s5 = inlined_call_operand.hbm [shape: f32[8,256], index: 5, kind: output, shape index: {}]  }
   0x1   :  { %11 = vsyncpa [#allocation6], 0 }
   0x2   :  { %12 = vsyncpa [#allocation9], 0  ;;  %s32_s20 = sshll.u32 %s361_s2, 4  ;;  %s33_s20 = int_to_ptr.hbm [resolvable:$true] %s32_s20 }
   0x3   :  { %13 = vsyncpa [#allocation4], 0  ;;  %s302_s21 = smov [#allocation5]   ;;  %s21_s25 = sshll.u32 %s360_s1, 4  ;;  %s22_s25 = int_to_ptr.hbm [resolvable:$true] %s21_s25 }
   0x4   :  { %s34_s22 = sshll.u32 %s302_s21, 4  ;;  %s303_s26 = smov [#allocation2]   ;;  %s35_s22 = int_to_ptr.vmem [resolvable:$true] %s34_s22 }
   0x5   :  { %37 = dma.hbm_to_vmem [thread:$0]  %s33_s20, 256, %s35_s22, [#allocation6]  }
   0x6   :  { %s23_s27 = sshll.u32 %s303_s26, 4  ;;  %s43_s30 = sshll.u32 %s362_s3, 4  ;;  %s24_s27 = int_to_ptr.vmem [resolvable:$true] %s23_s27  ;;  %s44_s30 = int_to_ptr.hbm [resolvable:$true] %s43_s30 }
   0x7   :  { %26 = dma.hbm_to_vmem [thread:$0]  %s22_s25, 256, %s24_s27, [#allocation3]  }
   0x8   :  { %s54_s7 = sshll.u32 %s363_s4, 4  ;;  %s304_s8 = smov [#allocation7]   ;;  %s55_s7 = int_to_ptr.hbm [resolvable:$true] %s54_s7 }
   0x9   :  { %s45_s9 = sshll.u32 %s304_s8, 4  ;;  %s305_s1 = smov [#allocation8]   ;;  %s46_s9 = int_to_ptr.vmem [resolvable:$true] %s45_s9 }
   0xa   :  { %48 = dma.hbm_to_vmem [thread:$0]  %s44_s30, 256, %s46_s9, [#allocation6]  }
   0xb   :  { %s56_s10 = sshll.u32 %s305_s1, 4  ;;  %s57_s10 = int_to_ptr.vmem [resolvable:$true] %s56_s10 }
   0xc   :  { %59 = dma.hbm_to_vmem [thread:$0]  %s55_s7, 256, %s57_s10, [#allocation9]  }
   0xd   :  { %294 = dma.done.wait [#allocation3], 256  }
   0xe   :  { %295 = vsyncadd [#allocation3], 4294967040 }
   0xf   :  { %296 = dma.done.wait [#allocation6], 512  }
  0x10   :  { %297 = vsyncadd [#allocation6], 4294966784 }
  0x11   :  { %298 = dma.done.wait [#allocation9], 256  }
  0x12   :  { %299 = vsyncadd [#allocation9], 4294967040  ;;  %v306_v0 = vmov 0   ;;  %v76_v1 = vld [vmem:[%s359_s0] sm:$0xff]  ;;  %v307_v2 = vmov 2   ;;  %v308_v17 = vmov 1  }
  0x13   :  { %165 = vset.pattern.permute.xlu0 %v306_v0  ;;  %167 = vset.pattern.permute.xlu1 %v307_v2  ;;  %v77_v3 = vsub.f32 0.0, %v76_v1  ;;  %v309_v18 = vmov 3   ;;  %v96_v21 = vld [vmem:[#allocation2] sm:$0xff]  ;;  %v97_v22 = vld [vmem:[#allocation2 + $0x8] sm:$0xff]  ;;  %v105_v23 = vld [vmem:[#allocation5] sm:$0xff]  ;;  %s310_s0 = smov [#allocation10]  }
  0x14   :  { %v106_v24 = vld [vmem:[#allocation5 + $0x8] sm:$0xff]  ;;  %v115_v25 = vld [vmem:[#allocation7] sm:$0xff]  ;;  %v116_v26 = vld [vmem:[#allocation7 + $0x8] sm:$0xff]  ;;  %s142_s4 = sshll.u32 %s310_s0, 4  ;;  %s144_s14 = sshll.u32 %s364_s5, 4  ;;  %s143_s4 = int_to_ptr.vmem [resolvable:$true] %s142_s4  ;;  %s145_s14 = int_to_ptr.hbm [resolvable:$true] %s144_s14 }
  0x15   :  { %v78_v4 = vmul.f32 1.442695, %v77_v3  ;;  %v125_v28 = vld [vmem:[#allocation8] sm:$0xff]  ;;  %v126_v29 = vld [vmem:[#allocation8 + $0x8] sm:$0xff] }
  0x17   :  { %170 = vpow2.f32 %v78_v4 }
  0x1d   :  { %v171_v5 = vpop.eup %170 }
  0x1e   :  { %v80_v6 = vadd.f32 1.0, %v171_v5 }
  0x20   :  { %172 = vrcp.f32 %v80_v6  ;;  %v92_v9 = vand.u32 2147483648, %v80_v6  ;;  %vm86_vm0 = vweird.f32 %v80_v6  ;;  %v90_v11 = vand.u32 2147483647, %v80_v6 }
  0x22   :  { %v93_v13 = vor.u32 1.1754944e-38, %v92_v9  ;;  %vm91_vm3 = vcmp.eq.f32.partialorder %v90_v11, 8.507059e+37 }
  0x26   :  { %v173_v7 = vpop.eup %172 }
  0x27   :  { %v82_v8 = vmul.f32 %v173_v7, %v80_v6  ;;  %vm87_vm1 = vweird.f32 %v173_v7 }
  0x28   :  { %vm88_vm2 = vmor %vm86_vm0, %vm87_vm1 }
  0x29   :  { %v83_v10 = vsub.f32 1.0, %v82_v8 }
  0x2b   :  { %v84_v12 = vmul.f32 %v173_v7, %v83_v10 }
  0x2d   :  { %v85_v14 = vadd.f32 %v173_v7, %v84_v12 }
  0x2f   :  { %v89_v15 = vsel %vm88_vm2, %v173_v7, %v85_v14 }
  0x30   :  { %v94_v16 = vsel %vm91_vm3, %v93_v13, %v89_v15 }
  0x31   :  { %100 = vperm.xlu0 %165, %v94_v16   ;;  %118 = vperm.xlu1 %167, %v94_v16  }
  0x39   :  { %166 = vset.pattern.permute.xlu0 %v308_v17  ;;  %168 = vset.pattern.permute.xlu1 %v309_v18 }
  0x3a   :  { %108 = vperm.xlu0 %166, %v94_v16   ;;  %128 = vperm.xlu1 %168, %v94_v16  }
  0x42   :  { %169 = vset.pattern.permute.xlu0 %v309_v18 }
  0xa3   :  { %v101_v19 = vpop.permute.xlu0 %100  ;;  %v119_v20 = vpop.permute.xlu1 %118 }
  0xa4   :  { %v103_v31 = vmul.f32 %v101_v19, %v96_v21  ;;  %v104_v32 = vmul.f32 %v101_v19, %v97_v22  ;;  %v121_v35 = vmul.f32 %v119_v20, %v115_v25  ;;  %v122_v36 = vmul.f32 %v119_v20, %v116_v26 }
  0xac   :  { %v109_v27 = vpop.permute.xlu0 %108  ;;  %v129_v30 = vpop.permute.xlu1 %128 }
  0xad   :  { %v111_v33 = vmul.f32 %v109_v27, %v105_v23  ;;  %v112_v34 = vmul.f32 %v109_v27, %v106_v24  ;;  %v131_v39 = vmul.f32 %v129_v30, %v125_v28  ;;  %v132_v40 = vmul.f32 %v129_v30, %v126_v29 }
  0xaf   :  { %v113_v37 = vadd.f32 %v111_v33, %v103_v31  ;;  %v114_v38 = vadd.f32 %v112_v34, %v104_v32 }
  0xb1   :  { %v123_v41 = vadd.f32 %v121_v35, %v113_v37  ;;  %v124_v42 = vadd.f32 %v122_v36, %v114_v38 }
  0xb3   :  { %v133_v43 = vadd.f32 %v131_v39, %v123_v41  ;;  %v134_v44 = vadd.f32 %v132_v40, %v124_v42 }
  0xb5   :  { %135 = vst [vmem:[#allocation10] sm:$0xff] %v133_v43 }
  0xb6   :  { %136 = vst [vmem:[#allocation10 + $0x8] sm:$0xff] %v134_v44 }
  0xb7   :  { %147 = dma.vmem_to_hbm [thread:$0]  %s143_s4, 256, %s145_s14, [#allocation4]  }
  0xb8   :  { %300 = dma.done.wait [#allocation4], 256  }
  0xb9   :  { %301 = vsyncadd [#allocation4], 4294967040 }
  0xba   :  { %152 = vsyncpa [#allocation3], 1 }
  0xbb   :  { %153 = vsyncpa [#allocation6], 1 }
  0xbc   :  { %154 = vsyncpa [#allocation9], 1 }
  0xbd   :  { %155 = vsyncpa [#allocation4], 1 }

</bundles_post_ra>
